<compile_context>
chip_gen: v6e
topology: v6e:2x2x1
jax: 0.10.0
libtpu: 0.0.40
codegen_flags: <defaults>
</compile_context>

<pallas_src>
import functools

import jax
import jax.numpy as jnp
from jax.experimental import pallas as pl
from jax.experimental.pallas import tpu as pltpu


def _round_up(a: int, b: int) -> int:
    return (a + b - 1) // b * b


def _ceil_div(a: int, b: int) -> int:
    return (a + b - 1) // b


def se_block_kernel(x_ref, w1_ref, b1_ref, w2_ref, b2_ref, o_ref):
    """One batch tile: o = x * sigmoid(relu(x @ W1 + b1) @ W2 + b2)."""
    x = x_ref[...]                                     # (TB, Dp) f32; kept f32 for the gate
    xc = x.astype(w1_ref.dtype)                        # MXU operand dtype (bf16 fast path)
    # linear1 + ReLU: f32 accumulation on the MXU, f32 elementwise on the VPU.
    h = jnp.dot(xc, w1_ref[...], preferred_element_type=jnp.float32) + b1_ref[...]
    h = jnp.maximum(h, 0.0)
    # linear2 + sigmoid: f32 accumulate, f32 transcendental on the EUP.
    g = jnp.dot(h.astype(w2_ref.dtype), w2_ref[...],
                preferred_element_type=jnp.float32) + b2_ref[...]
    g = jax.nn.sigmoid(g)
    o_ref[...] = (x * g).astype(o_ref.dtype)


@functools.lru_cache(maxsize=None)
def _single_buffer_supported() -> bool:
    """One-time probe: does this jax release honor pipeline_mode=pl.Buffered on
    pallas_call BlockSpecs?  (Used to keep grid-invariant weights single-buffered and
    save VMEM, especially on v7x's 64 MiB.)  Kept out of the hot path."""
    try:
        def k(x_ref, w_ref, o_ref):
            o_ref[...] = x_ref[...] + w_ref[...]

        f = pl.pallas_call(
            k,
            out_shape=jax.ShapeDtypeStruct((16, 128), jnp.float32),
            grid=(2,),
            in_specs=[
                pl.BlockSpec((8, 128), lambda i: (i, 0)),
                pl.BlockSpec((8, 128), lambda i: (0, 0), pipeline_mode=pl.Buffered(1)),
            ],
            out_specs=pl.BlockSpec((8, 128), lambda i: (i, 0)),
        )
        jax.block_until_ready(
            f(jnp.zeros((16, 128), jnp.float32), jnp.zeros((8, 128), jnp.float32)))
        return True
    except Exception:
        return False


def _resident_spec(shape, single_buffer):
    """BlockSpec for a grid-invariant operand (same block at every grid step)."""
    index_map = lambda i: (0,) * len(shape)
    if single_buffer:
        # Never changes across the grid -> a second pipeline buffer is pure VMEM waste.
        return pl.BlockSpec(shape, index_map, pipeline_mode=pl.Buffered(1))
    return pl.BlockSpec(shape, index_map)


@functools.partial(
    jax.jit,
    static_argnames=("compute_dtype", "out_dtype", "tb", "dp", "vmem_limit", "single_buffer"),
)
def _se_block_impl(x, w1, b1, w2, b2, *, compute_dtype, out_dtype, tb, dp, vmem_limit,
                   single_buffer):
    B, D = x.shape

    # Pad only the feature dim to a lane-dense multiple of 128 (zero columns: gate is
    # sigmoid(0)=0.5 but x there is 0; sliced off below).  The batch dim is NOT padded:
    # the ragged last tile relies on Pallas block masking (rows independent, OOB reads
    # never reach valid rows, OOB writes are dropped).  For production D % 128 == 0 this
    # whole prep is a no-op and is fused/constant-folded by jit anyway.
    x_in = jnp.pad(x, ((0, 0), (0, dp - D))) if dp != D else x

    def prep_w(w):
        wt = w.T.astype(compute_dtype)                          # (in, out) for x @ W
        return jnp.pad(wt, ((0, dp - D), (0, dp - D))) if dp != D else wt

    def prep_b(b):
        b2d = b.astype(jnp.float32).reshape(1, D)
        return jnp.pad(b2d, ((0, 0), (0, dp - D))) if dp != D else b2d

    w1_in, w2_in = prep_w(w1), prep_w(w2)
    b1_in, b2_in = prep_b(b1), prep_b(b2)

    w_itemsize = jnp.dtype(compute_dtype).itemsize
    out_itemsize = jnp.dtype(out_dtype).itemsize
    cost = pl.CostEstimate(
        flops=4 * B * D * D,                                    # two (B,D)x(D,D) matmuls
        transcendentals=B * dp,                                 # sigmoid
        bytes_accessed=B * dp * (4 + out_itemsize) + 2 * dp * dp * w_itemsize + 2 * dp * 4,
    )

    grid = (_ceil_div(B, tb),)
    out_p = pl.pallas_call(
        se_block_kernel,
        out_shape=jax.ShapeDtypeStruct((B, dp), out_dtype),
        grid=grid,
        in_specs=[
            pl.BlockSpec((tb, dp), lambda i: (i, 0)),           # streamed batch tile
            _resident_spec((dp, dp), single_buffer),            # W1 (VMEM-resident)
            _resident_spec((1, dp), single_buffer),             # b1 (VMEM-resident)
            _resident_spec((dp, dp), single_buffer),            # W2 (VMEM-resident)
            _resident_spec((1, dp), single_buffer),             # b2 (VMEM-resident)
        ],
        out_specs=pl.BlockSpec((tb, dp), lambda i: (i, 0)),
        compiler_params=pltpu.CompilerParams(
            # Batch tiles are independent -> shard the grid across v7x's 2 TensorCores.
            dimension_semantics=("parallel",),
            vmem_limit_bytes=vmem_limit,
        ),
        cost_estimate=cost,
    )(x_in, w1_in, b1_in, w2_in, b2_in)

    return out_p[:, :D] if dp != D else out_p


def se_block(x, w1, b1, w2, b2, *, compute_dtype=jnp.bfloat16, out_dtype=None):
    """SE block forward.

    x: (B, D). w1, w2: (D, D) PyTorch-style (out, in). b1, b2: (D,).
    compute_dtype: MXU operand dtype (bf16 default = v6e/v7x fast path; pass jnp.float32
                   for bit-accurate matmuls). Accumulation is always f32.
    out_dtype:     output dtype (default: x.dtype). Pass jnp.bfloat16 when the downstream
                   consumer allows it to halve the streamed write traffic.
    """
    B, D = x.shape
    compute_dtype = jnp.dtype(compute_dtype)
    out_dtype = jnp.dtype(x.dtype if out_dtype is None else out_dtype)

    dp = _round_up(max(D, 128), 128)                    # lane-dense feature dim
    single_buffer = _single_buffer_supported()

    # VMEM budget: ~80% of per-core capacity (v5e/v6e: 128 MiB -> ~102 MiB; v7x: 64 MiB
    # -> ~51 MiB, leaving headroom for Mosaic internals).
    try:
        vmem_cap = int(getattr(pltpu.get_tpu_info(), "vmem_capacity_bytes",
                               64 * 1024 * 1024))
    except Exception:
        vmem_cap = 64 * 1024 * 1024
    budget = int(vmem_cap * 0.8)

    w_itemsize = compute_dtype.itemsize
    out_itemsize = out_dtype.itemsize
    weight_bufs = 1 if single_buffer else 2
    resident = weight_bufs * (2 * dp * dp * w_itemsize + 2 * 8 * dp * 4)

    # Streamed bytes per batch row: x tile (f32, double-buffered) + out tile
    # (double-buffered) + ~3 f32 compiler-materialized intermediates (xc / h / g).
    per_row = dp * (2 * 4 + 2 * out_itemsize + 3 * 4)

    tb_vmem = max((budget - resident) // per_row, 8)             # fit the VMEM budget
    tb_target = max(_ceil_div(2 * 1024 * 1024, dp * 4), 256)     # >= 2 MiB per x tile
    tb_two = _round_up(_ceil_div(B, 2), 8)                       # >= 2 grid steps (v7x)
    tb = max(8, min(_round_up(B, 8), tb_target, tb_vmem, tb_two))
    tb = _round_up(tb, 8)

    # TODO(synk): when this SE block gates activations produced by an adjacent kernel,
    # fuse the final x*g multiply into that producer (or alias buffers) so x is not read
    # from HBM twice; not applicable to this standalone wrapper.
    return _se_block_impl(
        x, w1, b1, w2, b2,
        compute_dtype=compute_dtype, out_dtype=out_dtype,
        tb=int(tb), dp=int(dp), vmem_limit=int(budget), single_buffer=bool(single_buffer),
    )


def se_block_ref(x, w1, b1, w2, b2):
    h = jnp.maximum(x @ w1.T + b1, 0.0)
    g = jax.nn.sigmoid(h @ w2.T + b2)
    return x * g


if __name__ == "__main__":
    # Deliberately unaligned small shapes (B not a multiple of 8, D < 128) to exercise the
    # feature-padding path, the ragged last batch tile, and a 2-step "parallel" grid.
    B, D = 21, 32

    key = jax.random.PRNGKey(0)
    kx, kw1, kb1, kw2, kb2 = jax.random.split(key, 5)

    x = jax.random.normal(kx, (B, D), dtype=jnp.float32)
    # Deterministic parameter init mimicking nn.Linear's uniform(-1/sqrt(D), 1/sqrt(D)).
    bound = 1.0 / (D ** 0.5)
    w1 = jax.random.uniform(kw1, (D, D), minval=-bound, maxval=bound, dtype=jnp.float32)
    b1 = jax.random.uniform(kb1, (D,), minval=-bound, maxval=bound, dtype=jnp.float32)
    w2 = jax.random.uniform(kw2, (D, D), minval=-bound, maxval=bound, dtype=jnp.float32)
    b2 = jax.random.uniform(kb2, (D,), minval=-bound, maxval=bound, dtype=jnp.float32)

    ref = jax.block_until_ready(se_block_ref(x, w1, b1, w2, b2))

    # f32 MXU operands, f32 output: strict check that forward semantics are preserved.
    out_f32 = jax.block_until_ready(
        se_block(x, w1, b1, w2, b2, compute_dtype=jnp.float32))
    assert out_f32.shape == (B, D)
    assert jnp.allclose(out_f32, ref, atol=1e-5, rtol=1e-5), "f32 path mismatch vs reference"

    # Default fast path: bf16 MXU operands + bf16 output (halves streamed write traffic).
    out_bf16 = jax.block_until_ready(
        se_block(x, w1, b1, w2, b2, out_dtype=jnp.bfloat16))
    assert out_bf16.shape == (B, D)
    assert jnp.allclose(out_bf16.astype(jnp.float32), ref, atol=3e-2, rtol=3e-2), \
        "bf16 path mismatch vs reference"

    print("KERNEL_OK")
</pallas_src>

<mosaic_0001>
module attributes {stable_mosaic.version = 11 : i64} {
  func.func @k(%arg0: i32, %arg1: memref<8x128xf32, #tpu.memory_space<vmem>>, %arg2: memref<8x128xf32, #tpu.memory_space<vmem>>, %arg3: memref<8x128xf32, #tpu.memory_space<vmem>>) attributes {dimension_semantics = [#tpu.dimension_semantics<arbitrary>], iteration_bounds = array<i64: 2>, scalar_prefetch = 0 : i64, scratch_operands = 0 : i64, tpu.core_type = #tpu.core_type<tc>, window_params = [{transform_indices = @transform_0, window_bounds = array<i64: 8, 128>}, {pipeline_mode = #tpu.pipeline_mode<synchronous>, transform_indices = @transform_1, window_bounds = array<i64: 8, 128>}, {transform_indices = @transform_2, window_bounds = array<i64: 8, 128>}]} {
    %c0 = arith.constant 0 : index
    %c0_0 = arith.constant 0 : index
    %0 = vector.load %arg1[%c0, %c0_0] : memref<8x128xf32, #tpu.memory_space<vmem>>, vector<8x128xf32>
    %c0_1 = arith.constant 0 : index
    %c0_2 = arith.constant 0 : index
    %1 = vector.load %arg2[%c0_1, %c0_2] : memref<8x128xf32, #tpu.memory_space<vmem>>, vector<8x128xf32>
    %2 = arith.addf %0, %1 : vector<8x128xf32>
    %c0_3 = arith.constant 0 : index
    %c0_4 = arith.constant 0 : index
    %3 = vector.load %arg3[%c0_3, %c0_4] : memref<8x128xf32, #tpu.memory_space<vmem>>, vector<8x128xf32>
    tpu.vector_store %arg3[%c0_3, %c0_4], %2 {strides = array<i32>} : memref<8x128xf32, #tpu.memory_space<vmem>>, vector<8x128xf32>,
    return
  }
  func.func @transform_0(%arg0: i32) -> (i32, i32) {
    %c0_i32 = arith.constant 0 : i32
    %c0_i32_0 = arith.constant 0 : i32
    return %arg0, %c0_i32 : i32, i32
  }
  func.func @transform_1(%arg0: i32) -> (i32, i32) {
    %c0_i32 = arith.constant 0 : i32
    %c0_i32_0 = arith.constant 0 : i32
    %c0_i32_1 = arith.constant 0 : i32
    return %c0_i32, %c0_i32_0 : i32, i32
  }
  func.func @transform_2(%arg0: i32) -> (i32, i32) {
    %c0_i32 = arith.constant 0 : i32
    %c0_i32_0 = arith.constant 0 : i32
    return %arg0, %c0_i32 : i32, i32
  }
}

module attributes {stable_mosaic.version = 11 : i64} {
  func.func @se_block_kernel(%arg0: i32, %arg1: memref<16x128xf32, #tpu.memory_space<vmem>>, %arg2: memref<128x128xf32, #tpu.memory_space<vmem>>, %arg3: memref<1x128xf32, #tpu.memory_space<vmem>>, %arg4: memref<128x128xf32, #tpu.memory_space<vmem>>, %arg5: memref<1x128xf32, #tpu.memory_space<vmem>>, %arg6: memref<16x128xf32, #tpu.memory_space<vmem>>) attributes {dimension_semantics = [#tpu.dimension_semantics<parallel>], iteration_bounds = array<i64: 2>, scalar_prefetch = 0 : i64, scratch_operands = 0 : i64, tpu.core_type = #tpu.core_type<tc>, window_params = [{transform_indices = @transform_0, window_bounds = array<i64: 16, 128>}, {pipeline_mode = #tpu.pipeline_mode<synchronous>, transform_indices = @transform_1, window_bounds = array<i64: 128, 128>}, {pipeline_mode = #tpu.pipeline_mode<synchronous>, transform_indices = @transform_2, window_bounds = array<i64: 1, 128>}, {pipeline_mode = #tpu.pipeline_mode<synchronous>, transform_indices = @transform_3, window_bounds = array<i64: 128, 128>}, {pipeline_mode = #tpu.pipeline_mode<synchronous>, transform_indices = @transform_4, window_bounds = array<i64: 1, 128>}, {transform_indices = @transform_5, window_bounds = array<i64: 16, 128>}]} {
    %c0 = arith.constant 0 : index
    %c0_0 = arith.constant 0 : index
    %0 = vector.load %arg1[%c0, %c0_0] : memref<16x128xf32, #tpu.memory_space<vmem>>, vector<16x128xf32>
    %c0_1 = arith.constant 0 : index
    %c0_2 = arith.constant 0 : index
    %1 = vector.load %arg2[%c0_1, %c0_2] : memref<128x128xf32, #tpu.memory_space<vmem>>, vector<128x128xf32>
    %cst = arith.constant dense<0.000000e+00> : vector<16x128xf32>
    %2 = tpu.matmul %0, %1, %cst {dimension_numbers = #tpu.dot_dimension_numbers<[1], [0], [0], [1], [0, 0, 1, 1], [], []>} : vector<16x128xf32>, vector<128x128xf32>, vector<16x128xf32> -> vector<16x128xf32>
    %c0_3 = arith.constant 0 : index
    %c0_4 = arith.constant 0 : index
    %3 = vector.load %arg3[%c0_3, %c0_4] : memref<1x128xf32, #tpu.memory_space<vmem>>, vector<1x128xf32>
    %4 = vector.broadcast %3 : vector<1x128xf32> to vector<16x128xf32>
    %5 = arith.addf %2, %4 : vector<16x128xf32>
    %cst_5 = arith.constant 0.000000e+00 : f32
    %6 = vector.broadcast %cst_5 : f32 to vector<16x128xf32>
    %7 = arith.maximumf %5, %6 : vector<16x128xf32>
    %c0_6 = arith.constant 0 : index
    %c0_7 = arith.constant 0 : index
    %8 = vector.load %arg4[%c0_6, %c0_7] : memref<128x128xf32, #tpu.memory_space<vmem>>, vector<128x128xf32>
    %cst_8 = arith.constant dense<0.000000e+00> : vector<16x128xf32>
    %9 = tpu.matmul %7, %8, %cst_8 {dimension_numbers = #tpu.dot_dimension_numbers<[1], [0], [0], [1], [0, 0, 1, 1], [], []>} : vector<16x128xf32>, vector<128x128xf32>, vector<16x128xf32> -> vector<16x128xf32>
    %c0_9 = arith.constant 0 : index
    %c0_10 = arith.constant 0 : index
    %10 = vector.load %arg5[%c0_9, %c0_10] : memref<1x128xf32, #tpu.memory_space<vmem>>, vector<1x128xf32>
    %11 = vector.broadcast %10 : vector<1x128xf32> to vector<16x128xf32>
    %12 = arith.addf %9, %11 : vector<16x128xf32>
    %13 = arith.negf %12 : vector<16x128xf32>
    %14 = math.exp %13 : vector<16x128xf32>
    %cst_11 = arith.constant 1.000000e+00 : f32
    %15 = vector.broadcast %cst_11 : f32 to vector<16x128xf32>
    %16 = arith.addf %15, %14 : vector<16x128xf32>
    %17 = arith.divf %15, %16 : vector<16x128xf32>
    %18 = arith.mulf %0, %17 : vector<16x128xf32>
    %c0_12 = arith.constant 0 : index
    %c0_13 = arith.constant 0 : index
    %19 = vector.load %arg6[%c0_12, %c0_13] : memref<16x128xf32, #tpu.memory_space<vmem>>, vector<16x128xf32>
    tpu.vector_store %arg6[%c0_12, %c0_13], %18 {strides = array<i32>} : memref<16x128xf32, #tpu.memory_space<vmem>>, vector<16x128xf32>,
    return
  }
  func.func @transform_0(%arg0: i32) -> (i32, i32) {
    %c0_i32 = arith.constant 0 : i32
    %c0_i32_0 = arith.constant 0 : i32
    return %arg0, %c0_i32 : i32, i32
  }
  func.func @transform_1(%arg0: i32) -> (i32, i32) {
    %c0_i32 = arith.constant 0 : i32
    %c0_i32_0 = arith.constant 0 : i32
    %c0_i32_1 = arith.constant 0 : i32
    return %c0_i32, %c0_i32_0 : i32, i32
  }
  func.func @transform_2(%arg0: i32) -> (i32, i32) {
    %c0_i32 = arith.constant 0 : i32
    %c0_i32_0 = arith.constant 0 : i32
    %c0_i32_1 = arith.constant 0 : i32
    return %c0_i32, %c0_i32_0 : i32, i32
  }
  func.func @transform_3(%arg0: i32) -> (i32, i32) {
    %c0_i32 = arith.constant 0 : i32
    %c0_i32_0 = arith.constant 0 : i32
    %c0_i32_1 = arith.constant 0 : i32
    return %c0_i32, %c0_i32_0 : i32, i32
  }
  func.func @transform_4(%arg0: i32) -> (i32, i32) {
    %c0_i32 = arith.constant 0 : i32
    %c0_i32_0 = arith.constant 0 : i32
    %c0_i32_1 = arith.constant 0 : i32
    return %c0_i32, %c0_i32_0 : i32, i32
  }
  func.func @transform_5(%arg0: i32) -> (i32, i32) {
    %c0_i32 = arith.constant 0 : i32
    %c0_i32_0 = arith.constant 0 : i32
    return %arg0, %c0_i32 : i32, i32
  }
}

</mosaic_0001>

<bundles_post_ra>
// kernel: tpu_custom_call.1
= control target key start
LH: loop header
LB: loop body
LE: loop exit
PB: predicated region body
PF: predicated region fallthrough
CT: control target
= control target key end

     0   :  { %7 = vsyncpa [#allocation3], 0  ;;  %s649_s0 = inlined_call_operand.hbm [shape: f32[16,128], index: 0, kind: input, shape index: {}]   ;;  %s650_s1 = inlined_call_operand.hbm [shape: f32[8,128], index: 1, kind: input, shape index: {}]   ;;  %s651_s2 = inlined_call_operand.hbm [shape: f32[16,128], index: 2, kind: output, shape index: {}]  }
   0x1   :  { %9 = vsyncpa [#allocation3 + $0x1], 0 }
   0x2   :  { %10 = vsyncpa [#allocation6], 0 }
   0x3   :  { %11 = vsyncpa [#allocation4], 0 }
   0x4   :  { %13 = vsyncpa [#allocation4 + $0x1], 0  ;;  %s483_s9 = smov 0   ;;  %s485_s10 = smov 0  }
   0x5   :  { %s487_s11 = smov 0   ;;  %s489_s12 = smov 0  }
   0x6 LB: > { %s504_s13 = sadd.s32 4294967295, %s463_s12   ;;  %s270_s14 = sadd.s32 4294967294, %s463_s12   ;;  %s463_s12 = sphi %s489_s12, %s674_s12   ;;  %s459_s11 = sphi %s487_s11, %s673_s11   ;;  %s455_s10 = sphi %s485_s10, %s672_s10   ;;  %s451_s9 = sphi %s483_s9, %s671_s9  }
   0x7   : > { %p39_p0 = scmp.ne.s32.totalorder %s455_s10, %s451_s9  ;;  %p652_p1 = scmp.eq.s32.totalorder %s504_s13, 0 }
   0x8   : > { %p90_p3 = scmp.eq.s32.totalorder %s270_s14, 1  ;;  %p271_p5 = scmp.ge.s32.totalorder %s463_s12, 1 }
   0x9   : > { %p513_p4 = por %p652_p1, %p39_p0  ;;  %p97_p7 = scmp.lt.s32.totalorder %s463_s12, 3 }
   0xa   : > { %p518_p6 = por %p90_p3, %p39_p0  ;;  %s465_s18 = smov [#allocation5]  }
   0xb   : > { %s656_s15 = scalar_select %p513_p4, 1, 0 }
   0xc   : > { %s657_s16 = scalar_select %p518_p6, 1, 0 }
   0xd   : > { %p523_p8 = pnand %p271_p5, %p97_p7  ;;  %s110_s19 = sshll.u32 %s465_s18, 4  ;;  %s111_s19 = int_to_ptr.vmem [resolvable:$true] %s110_s19 }
   0xe   : > { %s531_s20 = sadd.s32 1, %s463_s12   ;;  %s26_s24 = sadd.s32 1, %s459_s11 }
   0xf   : > { %s658_s17 = scalar_select %p523_p8, 1, 0 }
  0x10   : > { %p292_p10 = pneg %p523_p8  ;;  %s23_s22 = ssub.s32 %s463_s12, %s531_s20 }
  0x11   : > { %p541_p12 = scmp.eq.s32.totalorder %s23_s22, 0  ;;  %p33_p13 = scmp.ne.s32.totalorder %s459_s11, %s455_s10 }
  0x12   : > { %p535_p11 = pnand %p292_p10, %p652_p1  ;;  %s352_s25 = scalar_lea.vmem %s111_s19, 128 }
  0x13   : > { %p353_p3 = scmp.ne.s32.totalorder %s111_s19, %s352_s25  ;;  %p360_p9 = scmp.lt.s32.totalorder %s111_s19, %s111_s19 }
  0x14   : > { %p343_p0 = pneg %p535_p11  ;;  %p361_p2 = scmp.lt.s32.totalorder %s352_s25, %s352_s25 }
  0x16   : > { %p355_p5 = pnand %p353_p3, %p343_p0  ;;  %p362_p10 = por %p361_p2, %p360_p9 }
  0x18   : > { %p356_p7 = pneg %p355_p5 }
  0x1a   : > { %p363_p1 = pnand %p362_p10, %p356_p7 }
  0x1c   : > { %366 = shalt.err (!%p363_p1)
}
  0x1d   : > { %295 = dma.hbm_to_vmem [thread:$0]  (!%p535_p11), %s650_s1, 128, %s111_s19, [#allocation6]  }
  0x1e   : > { %s558_s28 = scalar_select %p541_p12, %s459_s11, %s26_s24  }
  0x1f   : > { %p34_p1 = scmp.eq.s32.totalorder %s463_s12, 0  ;;  %p661_p2 = scmp.eq.s32.totalorder %s504_s13, 1 }
  0x20   : > { %p305_p0 = scmp.lt.s32.totalorder %s463_s12, 2  ;;  %s121_s30 = sand.u32 1, %s459_s11  }
  0x21   : > { %p566_p9 = por %p661_p2, %p33_p13  ;;  %p35_p3 = por %p34_p1, %p33_p13 }
  0x22   : > { %s274_s3 = sshll.u32 %s121_s30, 3  ;;  %s275_s4 = sshll.u32 %s463_s12, 7 }
  0x23   : > { %s662_s29 = scalar_select %p566_p9, 1, 0 }
  0x24   : > { %s579_s7 = scalar_lea.hbm %s649_s0, %s275_s4  ;;  %s125_s8 = scalar_lea.vmem [#allocation2], %s274_s3 }
  0x25   : > { %s132_s14 = sshll.u32 %s125_s8, 4  ;;  %p581_p11 = pnand %p305_p0, %p35_p3  ;;  %s133_s14 = int_to_ptr.vmem [resolvable:$true] %s132_s14 }
  0x26   : > { %s122_s19 = scalar_lea.sflag [#allocation3], %s121_s30  ;;  %s367_s21 = scalar_lea.hbm %s579_s7, 128 }
  0x27   : > { %p368_p12 = scmp.ne.s32.totalorder %s579_s7, %s367_s21  ;;  %p369_p13 = pneg %p581_p11 }
  0x28   : > { %s372_s24 = scalar_lea.hbm %s649_s0, 256  ;;  %p373_p10 = scmp.lt.s32.totalorder %s579_s7, %s649_s0 }
  0x29   : > { %p370_p5 = pnand %p369_p13, %p368_p12  ;;  %p374_p1 = scmp.lt.s32.totalorder %s372_s24, %s367_s21 }
  0x2b   : > { %p371_p7 = pneg %p370_p5  ;;  %p375_p2 = por %p374_p1, %p373_p10 }
  0x2d   : > { %p376_p0 = pnand %p375_p2, %p371_p7 }
  0x2f   : > { %379 = shalt.err (!%p376_p0)
}
  0x30   : > { %s380_s27 = scalar_lea.vmem %s133_s14, 128  ;;  %s466_s30 = smov [#allocation2]  }
  0x31   : > { %p381_p3 = scmp.ne.s32.totalorder %s133_s14, %s380_s27  ;;  %s385_s3 = sshll.u32 %s466_s30, 4  ;;  %s386_s3 = int_to_ptr.vmem [resolvable:$false] %s385_s3 }
  0x32   : > { %s387_s4 = scalar_lea.vmem %s386_s3, 256  ;;  %p388_p12 = scmp.lt.s32.totalorder %s133_s14, %s386_s3 }
  0x33   : > { %p383_p6 = pnand %p381_p3, %p369_p13  ;;  %p389_p5 = scmp.lt.s32.totalorder %s387_s4, %s380_s27 }
  0x35   : > { %p384_p9 = pneg %p383_p6  ;;  %p390_p4 = por %p389_p5, %p388_p12 }
  0x37   : > { %p391_p8 = pnand %p390_p4, %p384_p9 }
  0x39   : > { %394 = shalt.err (!%p391_p8)
}
  0x3a   : > { %299 = dma.hbm_to_vmem [thread:$0]  (!%p581_p11), %s579_s7, 128, %s133_s14, %s122_s19  }
  0x3b   : > { %p664_p7 = scmp.ne.s32.totalorder %s658_s17, 0 }
  0x3c   : > { %s602_s5 = sand.u32 (!%p664_p7), 1, %s455_s10   ;;  %p665_p6 = scmp.ne.s32.totalorder (!%p664_p7), %s656_s15, 0 }
  0x3d   : > { %141 = sbr.rel (%p664_p7) target bundleno = 95 (0x5f), region = 28  ;;  %s277_s6 = sshll.u32 (!%p664_p7), %s602_s5, 3 }
  0x3e   : > { %s144_s8 = scalar_lea.sflag (!%p664_p7), [#allocation3], %s602_s5  ;;  %s147_s21 = scalar_lea.vmem (!%p664_p7), [#allocation2], %s277_s6 }
  0x42   : > { %438 = dma.done.wait (%p665_p6), %s144_s8, 128  }
  0x43   : > { %440 = vsyncadd (%p665_p6), %s144_s8, 4294967168  ;;  %p666_p4 = scmp.eq.s32.totalorder %s504_s13, 0 }
  0x45   : > { %442 = dma.done.wait (%p666_p4), [#allocation6], 128   ;;  %p667_p8 = pmov %p666_p4 }
  0x46   : > { %s171_s17 = scalar_lea.vmem [#allocation7], %s277_s6  ;;  %s281_s14 = sshll.u32 %s504_s13, 7  ;;  %v172_v0 = vld [vmem:[%s147_s21] sm:$0xff]  ;;  %v173_v1 = vld [vmem:[#allocation5] sm:$0xff] }
  0x47   : > { %444 = vsyncadd (%p667_p8), [#allocation6], 4294967168  ;;  %s190_s7 = sshll.u32 %s171_s17, 4  ;;  %v174_v2 = vadd.f32 %v173_v1, %v172_v0  ;;  %s188_s15 = scalar_lea.hbm %s651_s2, %s281_s14  ;;  %s191_s7 = int_to_ptr.vmem [resolvable:$true] %s190_s7 }
  0x48   : > { %s177_s22 = scalar_lea.sflag [#allocation4], %s602_s5  ;;  %s395_s23 = scalar_lea.vmem %s191_s7, 128 }
  0x49   : > { %175 = vst [vmem:[%s171_s17] sm:$0xff] %v174_v2  ;;  %p396_p9 = scmp.ne.s32.totalorder %s191_s7, %s395_s23  ;;  %p668_p11 = scmp.ne.s32.totalorder %s662_s29, 0 }
  0x4a   : > { %s467_s24 = smov [#allocation7]  }
  0x4b   : > { %p397_p13 = pnand %p396_p9, %p668_p11  ;;  %s399_s25 = sshll.u32 %s467_s24, 4  ;;  %s400_s25 = int_to_ptr.vmem [resolvable:$false] %s399_s25 }
  0x4c   : > { %s401_s26 = scalar_lea.vmem %s400_s25, 256  ;;  %p402_p1 = scmp.lt.s32.totalorder %s191_s7, %s400_s25 }
  0x4d   : > { %p398_p10 = pneg %p397_p13  ;;  %p403_p2 = scmp.lt.s32.totalorder %s401_s26, %s395_s23 }
  0x4f   : > { %p404_p0 = por %p403_p2, %p402_p1 }
  0x51   : > { %p405_p3 = pnand %p404_p0, %p398_p10 }
  0x53   : > { %408 = shalt.err (!%p405_p3)
}
  0x54   : > { %s409_s13 = scalar_lea.hbm %s188_s15, 128  ;;  %s413_s3 = scalar_lea.hbm %s651_s2, 256 }
  0x55   : > { %p410_p12 = scmp.ne.s32.totalorder %s188_s15, %s409_s13  ;;  %p414_p6 = scmp.lt.s32.totalorder %s188_s15, %s651_s2 }
  0x56   : > { %p415_p4 = scmp.lt.s32.totalorder %s413_s3, %s409_s13 }
  0x57   : > { %p411_p5 = pnand %p410_p12, %p668_p11 }
  0x58   : > { %p416_p8 = por %p415_p4, %p414_p6 }
  0x59   : > { %p412_p7 = pneg %p411_p5 }
  0x5b   : > { %p417_p9 = pnand %p416_p8, %p412_p7 }
  0x5d   : > { %420 = shalt.err (!%p417_p9)
}
  0x5e   : > { %290 = dma.vmem_to_hbm [thread:$0]  (%p668_p11), %s191_s7, 128, %s188_s15, %s177_s22  }
  0x5f PF: > { %s202_s6 = sand.u32 1, %s451_s9   ;;  %p669_p13 = scmp.ne.s32.totalorder %s657_s16, 0 }
  0x60   : > { %p670_p10 = scmp.ge.s32.totalorder %s463_s12, 2  ;;  %s203_s8 = scalar_lea.sflag [#allocation4], %s202_s6 }
  0x62   : > { %p301_p1 = pnand %p670_p10, %p669_p13 }
  0x64   : > { %p302_p2 = pneg %p301_p1 }
  0x66   : > { %446 = dma.done.wait (%p302_p2), %s203_s8, 128  }
  0x67   : > { %448 = vsyncadd (%p302_p2), %s203_s8, 4294967168  ;;  %p16_p0 = scmp.ge.s32.totalorder %s531_s20, 4   ;;  %s671_s9 = smov %s455_s10 }
  0x68   : > { %s672_s10 = smov %s459_s11  ;;  %s673_s11 = smov %s558_s28 }
  0x69   : > { %s674_s12 = smov %s531_s20  ;;  %18 = sbr.rel (!%p16_p0) target bundleno = 6 (0x6), region = 77 }
  0x6e   :  { %208 = vsyncpa [#allocation3], 1 }
  0x6f   :  { %210 = vsyncpa [#allocation3 + $0x1], 1 }
  0x70   :  { %211 = vsyncpa [#allocation6], 1 }
  0x71   :  { %212 = vsyncpa [#allocation4], 1 }
  0x72   :  { %214 = vsyncpa [#allocation4 + $0x1], 1 }

// kernel: _se_block_impl.1
= control target key start
LH: loop header
LB: loop body
LE: loop exit
PB: predicated region body
PF: predicated region fallthrough
CT: control target
= control target key end

     0   :  { %10 = vsyncpa [#allocation3], 0  ;;  %s1044_s0 = inlined_call_operand.vmem [shape: f32[21,128], index: 0, kind: input, shape index: {}]   ;;  %s1045_s1 = inlined_call_operand.vmem [shape: f32[128,128], index: 1, kind: input, shape index: {}]   ;;  %s1046_s2 = inlined_call_operand.vmem [shape: f32[1,128], index: 2, kind: input, shape index: {}]   ;;  %s1047_s3 = inlined_call_operand.vmem [shape: f32[128,128], index: 3, kind: input, shape index: {}]   ;;  %s1048_s4 = inlined_call_operand.vmem [shape: f32[1,128], index: 4, kind: input, shape index: {}]   ;;  %s1049_s5 = inlined_call_operand.hbm [shape: f32[21,128], index: 5, kind: output, shape index: {}]  }
   0x1   :  { %12 = vsyncpa [#allocation3 + $0x1], 0  ;;  %s818_s18 = smov 0   ;;  %s820_s19 = smov 0  }
   0x2   :  { %s822_s20 = smov 0   ;;  %s824_s21 = smov 0  }
   0x3 LB: > { %s839_s22 = sadd.s32 4294967295, %s783_s21   ;;  %s548_s23 = sadd.s32 4294967294, %s783_s21   ;;  %s783_s21 = sphi %s824_s21, %s1055_s21   ;;  %s779_s20 = sphi %s822_s20, %s1054_s20   ;;  %s775_s19 = sphi %s820_s19, %s1053_s19   ;;  %s771_s18 = sphi %s818_s18, %s1052_s18  }
   0x4   : > { %s843_s24 = sadd.s32 1, %s783_s21   ;;  %s135_s25 = sadd.s32 1, %s779_s20 }
   0x5   : > { %s132_s26 = ssub.s32 %s783_s21, %s843_s24  ;;  %p145_p0 = scmp.ne.s32.totalorder %s779_s20, %s775_s19 }
   0x6   : > { %p133_p1 = scmp.eq.s32.totalorder %s132_s26, 0  ;;  %p146_p2 = scmp.eq.s32.totalorder %s839_s22, 1 }
   0x7   : > { %p151_p3 = scmp.ne.s32.totalorder %s775_s19, %s771_s18  ;;  %p152_p4 = scmp.eq.s32.totalorder %s548_s23, 1 }
   0x8   : > { %s854_s27 = scalar_select %p133_p1, %s779_s20, %s135_s25  }
   0x9   : > { %p856_p5 = por %p146_p2, %p145_p0  ;;  %p860_p6 = por %p152_p4, %p151_p3 }
   0xa   : > { %p551_p7 = scmp.ge.s32.totalorder %s783_s21, 1  ;;  %p199_p8 = scmp.lt.s32.totalorder %s783_s21, 3 }
   0xc   : > { %p200_p9 = pnand %p551_p7, %p199_p8 }
   0xd   : > { %s873_s9 = sshll.u32 (!%p200_p9), %s839_s22, 1  ;;  %s228_s25 = sand.u32 (!%p200_p9), 1, %s775_s19  }
   0xe   : > { %203 = sbr.rel (%p200_p9) target bundleno = 511 (0x1ff), region = 40  ;;  %p236_p10 = scmp.lt.s32.totalorder (!%p200_p9), %s873_s9, 2 }
   0xf   : > { %s552_s7 = sshll.u32 (!%p200_p9), %s228_s25, 4  ;;  %s985_s10 = scalar_lea.sflag (!%p200_p9), [#allocation3], %s228_s25 }
  0x10   : > { %s230_s8 = scalar_lea.vmem (!%p200_p9), [#allocation2], %s552_s7 }
  0x13   : > { %v267_v0 = vld [vmem:[%s1045_s1 + $0x78] sm:$0xff]  ;;  %v266_v1 = vld [vmem:[%s1045_s1 + $0x70] sm:$0xff]  ;;  %v265_v2 = vld [vmem:[%s1045_s1 + $0x68] sm:$0xff]  ;;  %s237_s12 = scalar_select %p236_p10, %s873_s9, 2 }
  0x14   : > { %605 = vmatprep.subr.mxu0 %v267_v0  ;;  %v264_v3 = vld [vmem:[%s1045_s1 + $0x60] sm:$0xff]  ;;  %v367_v4 = vld [vmem:[%s1047_s3 + $0x78] sm:$0xff]  ;;  %v366_v6 = vld [vmem:[%s1047_s3 + $0x70] sm:$0xff]  ;;  %s475_s11 = ssub.s32 (%p856_p5), 3, %s873_s9 }
  0x15   : > { %606 = vmatpush3.msra.mxu0 %v267_v0  ;;  %s554_s15 = sshll.u32 %s237_s12, 3  ;;  %v263_v5 = vld [vmem:[%s1045_s1 + $0x58] sm:$0xff]  ;;  %640 = vmatprep.subr.mxu1 %v367_v4  ;;  %v262_v8 = vld [vmem:[%s1045_s1 + $0x50] sm:$0xff]  ;;  %v365_v9 = vld [vmem:[%s1047_s3 + $0x68] sm:$0xff]  ;;  %p476_p11 = scmp.lt.s32.totalorder (%p856_p5), %s475_s11, 2 }
  0x16   : > { %607 = vmatprep.subr.mxu0 %v266_v1  ;;  %s892_s6 = scalar_lea.vmem %s1044_s0, %s554_s15  ;;  %641 = vmatpush3.msra.mxu1 %v367_v4  ;;  %v261_v10 = vld [vmem:[%s1045_s1 + $0x48] sm:$0xff]  ;;  %v364_v11 = vld [vmem:[%s1047_s3 + $0x60] sm:$0xff]  ;;  %v363_v13 = vld [vmem:[%s1047_s3 + $0x58] sm:$0xff] }
  0x17   : > { %608 = vmatpush3.msra.mxu0 %v266_v1  ;;  %v898_v7 = vld [vmem:[%s892_s6] sm:$0xff]  ;;  %642 = vmatprep.subr.mxu1 %v366_v6  ;;  %v259_v14 = vld [vmem:[%s1045_s1 + $0x38] sm:$0xff]  ;;  %v362_v15 = vld [vmem:[%s1047_s3 + $0x50] sm:$0xff] }
  0x18   : > { %609 = vmatprep.subr.mxu0 %v265_v2  ;;  %637 = vmatprep.mubr.f32.mxu0 %v898_v7  ;;  %v260_v12 = vld [vmem:[%s1045_s1 + $0x40] sm:$0xff]  ;;  %v258_v16 = vld [vmem:[%s1045_s1 + $0x30] sm:$0xff]  ;;  %v361_v17 = vld [vmem:[%s1047_s3 + $0x48] sm:$0xff] }
  0x19   : > { %610 = vmatpush3.msra.mxu0 %v265_v2  ;;  %643 = vmatpush3.msra.mxu1 %v366_v6  ;;  %v257_v18 = vld [vmem:[%s1045_s1 + $0x28] sm:$0xff]  ;;  %v360_v19 = vld [vmem:[%s1047_s3 + $0x40] sm:$0xff]  ;;  %v359_v21 = vld [vmem:[%s1047_s3 + $0x38] sm:$0xff] }
  0x1a   : > { %611 = vmatprep.subr.mxu0 %v264_v3  ;;  %644 = vmatprep.subr.mxu1 %v365_v9  ;;  %v256_v20 = vld [vmem:[%s1045_s1 + $0x20] sm:$0xff]  ;;  %v255_v22 = vld [vmem:[%s1045_s1 + $0x18] sm:$0xff]  ;;  %v358_v23 = vld [vmem:[%s1047_s3 + $0x30] sm:$0xff] }
  0x1b   : > { %612 = vmatpush3.msra.mxu0 %v264_v3  ;;  %645 = vmatpush3.msra.mxu1 %v365_v9  ;;  %v254_v24 = vld [vmem:[%s1045_s1 + $0x10] sm:$0xff]  ;;  %v357_v25 = vld [vmem:[%s1047_s3 + $0x28] sm:$0xff]  ;;  %v356_v27 = vld [vmem:[%s1047_s3 + $0x20] sm:$0xff] }
  0x1c   : > { %613 = vmatprep.subr.mxu0 %v263_v5  ;;  %646 = vmatprep.subr.mxu1 %v364_v11  ;;  %v253_v26 = vld [vmem:[%s1045_s1 + $0x8] sm:$0xff]  ;;  %v252_v28 = vld [vmem:[%s1045_s1] sm:$0xff]  ;;  %v355_v30 = vld [vmem:[%s1047_s3 + $0x18] sm:$0xff] }
  0x1d   : > { %614 = vmatpush3.msra.mxu0 %v263_v5  ;;  %647 = vmatpush3.msra.mxu1 %v364_v11  ;;  %v251_v29 = vld [vmem:[%s892_s6 + $0x8] sm:$0xff]  ;;  %v354_v31 = vld [vmem:[%s1047_s3 + $0x10] sm:$0xff]  ;;  %v352_v33 = vld [vmem:[%s1047_s3] sm:$0xff] }
  0x1e   : > { %615 = vmatprep.subr.mxu0 %v262_v8  ;;  %648 = vmatprep.subr.mxu1 %v363_v13  ;;  %v353_v32 = vld [vmem:[%s1047_s3 + $0x8] sm:$0xff]  ;;  %v555_v34 = vld [vmem:[%s1046_s2] ss:$0 sm:$0xff] }
  0x1f   : > { %616 = vmatpush3.msra.mxu0 %v262_v8  ;;  %649 = vmatpush3.msra.mxu1 %v363_v13  ;;  %v556_v41 = vld [vmem:[%s1048_s4] ss:$0 sm:$0xff] }
  0x20   : > { %617 = vmatprep.subr.mxu0 %v261_v10  ;;  %650 = vmatprep.subr.mxu1 %v362_v15 }
  0x21   : > { %618 = vmatpush3.msra.mxu0 %v261_v10  ;;  %651 = vmatpush3.msra.mxu1 %v362_v15 }
  0x22   : > { %619 = vmatprep.subr.mxu0 %v260_v12  ;;  %652 = vmatprep.subr.mxu1 %v361_v17 }
  0x23   : > { %620 = vmatpush3.msra.mxu0 %v260_v12  ;;  %653 = vmatpush3.msra.mxu1 %v361_v17 }
  0x24   : > { %621 = vmatprep.subr.mxu0 %v259_v14  ;;  %654 = vmatprep.subr.mxu1 %v360_v19 }
  0x25   : > { %622 = vmatpush3.msra.mxu0 %v259_v14  ;;  %655 = vmatpush3.msra.mxu1 %v360_v19 }
  0x26   : > { %623 = vmatprep.subr.mxu0 %v258_v16  ;;  %656 = vmatprep.subr.mxu1 %v359_v21 }
  0x27   : > { %624 = vmatpush3.msra.mxu0 %v258_v16  ;;  %657 = vmatpush3.msra.mxu1 %v359_v21 }
  0x28   : > { %625 = vmatprep.subr.mxu0 %v257_v18  ;;  %658 = vmatprep.subr.mxu1 %v358_v23 }
  0x29   : > { %626 = vmatpush3.msra.mxu0 %v257_v18  ;;  %659 = vmatpush3.msra.mxu1 %v358_v23 }
  0x2a   : > { %627 = vmatprep.subr.mxu0 %v256_v20  ;;  %660 = vmatprep.subr.mxu1 %v357_v25 }
  0x2b   : > { %628 = vmatpush3.msra.mxu0 %v256_v20  ;;  %661 = vmatpush3.msra.mxu1 %v357_v25 }
  0x2c   : > { %629 = vmatprep.subr.mxu0 %v255_v22  ;;  %662 = vmatprep.subr.mxu1 %v356_v27 }
  0x2d   : > { %630 = vmatpush3.msra.mxu0 %v255_v22  ;;  %663 = vmatpush3.msra.mxu1 %v356_v27 }
  0x2e   : > { %631 = vmatprep.subr.mxu0 %v254_v24  ;;  %664 = vmatprep.subr.mxu1 %v355_v30 }
  0x2f   : > { %632 = vmatpush3.msra.mxu0 %v254_v24  ;;  %665 = vmatpush3.msra.mxu1 %v355_v30 }
  0x30   : > { %633 = vmatprep.subr.mxu0 %v253_v26  ;;  %666 = vmatprep.subr.mxu1 %v354_v31 }
  0x31   : > { %634 = vmatpush3.msra.mxu0 %v253_v26  ;;  %667 = vmatpush3.msra.mxu1 %v354_v31 }
  0x32   : > { %635 = vmatprep.subr.mxu0 %v252_v28  ;;  %668 = vmatprep.subr.mxu1 %v353_v32 }
  0x33   : > { %636 = vmatpush3.msra.mxu0 %v252_v28  ;;  %669 = vmatpush3.msra.mxu1 %v353_v32 }
  0x34   : > { %638 = vmatmul.mubr.f32.vlgmr.msra.gmra.mxu0 %v251_v29  ;;  %670 = vmatprep.subr.mxu1 %v352_v33 }
  0x35   : > { %671 = vmatpush3.msra.mxu1 %v352_v33 }
  0xf4   : > { %v639_v35 = vpop.f32.mrf.mxu0 }
  0xf5   : > { %v347_v36 = vadd.f32 %v639_v35, %v555_v34 }
  0xf6   : > { %v341_v37 = vpop.f32.mrf.mxu0 }
  0xf7   : > { %v342_v38 = vadd.f32 %v555_v34, %v341_v37  ;;  %v351_v40 = vmax.f32 %v347_v36, 0.0 }
  0xf9   : > { %v350_v39 = vmax.f32 %v342_v38, 0.0 }
  0xfb   : > { %672 = vmatprep.mubr.f32.mxu1 %v350_v39 }
  0xfc   : > { %673 = vmatmul.mubr.f32.vlgmr.msra.gmra.mxu1 %v351_v40 }
 0x1bc   : > { %v674_v42 = vpop.f32.mrf.mxu1 }
 0x1bd   : > { %v447_v43 = vadd.f32 %v674_v42, %v556_v41 }
 0x1be   : > { %v441_v44 = vpop.f32.mrf.mxu1 }
 0x1bf   : > { %v558_v45 = vmul.f32 -1.442695, %v447_v43  ;;  %v442_v46 = vadd.f32 %v556_v41, %v441_v44 }
 0x1c1   : > { %715 = vpow2.f32 %v558_v45  ;;  %v557_v47 = vmul.f32 -1.442695, %v442_v46 }
 0x1c3   : > { %717 = vpow2.f32 %v557_v47 }
 0x1ce   : > { %v716_v48 = vpop.eup %715 }
 0x1cf   : > { %v457_v49 = vadd.f32 1.0, %v716_v48 }
 0x1d0   : > { %v718_v50 = vpop.eup %717 }
 0x1d1   : > { %719 = vrcp.f32 %v457_v49  ;;  %v456_v51 = vadd.f32 1.0, %v718_v50 }
 0x1d3   : > { %721 = vrcp.f32 %v456_v51 }
 0x1de   : > { %v720_v52 = vpop.eup %719 }
 0x1df   : > { %v463_v53 = vmul.f32 %v720_v52, %v251_v29  ;;  %473 = sbr.rel (!%p856_p5) target bundleno = 511 (0x1ff), region = 44 }
 0x1e0   : > { %v722_v54 = vpop.eup %721 }
 0x1e1   : > { %465 = vst [vmem:[%s230_s8 + $0x8] sm:$0xff] %v463_v53  ;;  %v462_v55 = vmul.f32 %v722_v54, %v898_v7 }
 0x1e3   : > { %464 = vst [vmem:[%s230_s8] sm:$0xff] %v462_v55 }
 0x1e4   : > { %s1057_s11 = smov (!%p476_p11, %s475_s11), 2 }
 0x1e5   : > { %s990_s12 = sshll.u32 %s1057_s11, 7 }
 0x1e6   : > { %s480_s13 = ssub.s32 256, %s990_s12 }
 0x1e7   : > { %481 = vsyncadd %s985_s10, %s480_s13  ;;  %p562_p12 = scmp.ne.s32.totalorder %s990_s12, 0  ;;  %s568_s14 = sshll.u32 %s839_s22, 8 }
 0x1e8   : > { %s999_s28 = scalar_lea.hbm %s1049_s5, %s568_s14  ;;  %s486_s16 = sshll.u32 %s230_s8, 4  ;;  %s1001_s16 = int_to_ptr.vmem [resolvable:$true] %s486_s16 }
 0x1e9   : > { %s723_s9 = scalar_lea.vmem %s1001_s16, %s990_s12  ;;  %s785_s17 = smov [#allocation2]  }
 0x1ea   : > { %p724_p13 = scmp.ne.s32.totalorder %s1001_s16, %s723_s9  ;;  %s727_s23 = sshll.u32 %s785_s17, 4  ;;  %s728_s23 = int_to_ptr.vmem [resolvable:$false] %s727_s23 }
 0x1eb   : > { %s729_s22 = scalar_lea.vmem %s728_s23, 512  ;;  %p730_p2 = scmp.lt.s32.totalorder %s1001_s16, %s728_s23 }
 0x1ec   : > { %p725_p0 = pnand %p724_p13, %p562_p12  ;;  %p731_p3 = scmp.lt.s32.totalorder %s729_s22, %s723_s9 }
 0x1ee   : > { %p726_p1 = pneg %p725_p0  ;;  %p732_p4 = por %p731_p3, %p730_p2 }
 0x1f0   : > { %p733_p5 = pnand %p732_p4, %p726_p1 }
 0x1f2   : > { %736 = shalt.err (!%p733_p5)
}
 0x1f3   : > { %s737_s25 = scalar_lea.hbm %s999_s28, %s990_s12  ;;  %s741_s7 = scalar_lea.hbm %s1049_s5, 384 }
 0x1f4   : > { %p738_p7 = scmp.ne.s32.totalorder %s999_s28, %s737_s25  ;;  %p742_p10 = scmp.lt.s32.totalorder %s999_s28, %s1049_s5 }
 0x1f5   : > { %p743_p11 = scmp.lt.s32.totalorder %s741_s7, %s737_s25 }
 0x1f6   : > { %p739_p8 = pnand %p738_p7, %p562_p12 }
 0x1f7   : > { %p744_p13 = por %p743_p11, %p742_p10 }
 0x1f8   : > { %p740_p9 = pneg %p739_p8 }
 0x1fa   : > { %p745_p0 = pnand %p744_p13, %p740_p9 }
 0x1fc   : > { %748 = shalt.err (!%p745_p0)
}
 0x1fd   : > { %s786_s13 = smov 128   ;;  %s787_s14 = smov 8  }
 0x1fe   : > { %492 = dma.vmem_to_hbm [thread:$0]  (%p562_p12), %s1001_s16, %s990_s12, %s999_s28, %s985_s10, %s786_s13, %s786_s13, %s787_s14  }
 0x1ff PF: > { %p680_p1 = scmp.ge.s32.totalorder %s783_s21, 2  ;;  %s501_s15 = sand.u32 1, %s771_s18  }
 0x200   : > { %s502_s6 = scalar_lea.sflag [#allocation3], %s501_s15 }
 0x201   : > { %p677_p2 = pnand %p680_p1, %p860_p6 }
 0x203   : > { %p678_p3 = pneg %p677_p2 }
 0x205   : > { %766 = dma.done.wait (%p678_p3), %s502_s6, 256  }
 0x206   : > { %768 = vsyncadd (%p678_p3), %s502_s6, 4294967040  ;;  %p15_p4 = scmp.ge.s32.totalorder %s843_s24, 4   ;;  %s1052_s18 = smov %s775_s19 }
 0x207   : > { %s1053_s19 = smov %s779_s20  ;;  %s1054_s20 = smov %s854_s27 }
 0x208   : > { %s1055_s21 = smov %s843_s24  ;;  %17 = sbr.rel (!%p15_p4) target bundleno = 3 (0x3), region = 75 }
 0x20d   :  { %507 = vsyncpa [#allocation3], 1 }
 0x20e   :  { %509 = vsyncpa [#allocation3 + $0x1], 1 }

</bundles_post_ra>
